<compile_context>
chip_gen: v7x
topology: tpu7x:2x2x1
jax: 0.10.0
libtpu: 0.0.40
codegen_flags: <defaults>
</compile_context>

<pallas_src>
import functools

import jax
import jax.numpy as jnp
from jax.experimental import pallas as pl
from jax.experimental.pallas import tpu as pltpu


# ----------------------------------------------------------------------------
# Fused kernel: tiled global-avg-pool -> 1x1 conv -> ReLU -> spatial broadcast
# ----------------------------------------------------------------------------
def _aspp_pooling_kernel(x_ref, w_ref, o_ref, pooled_ref, *, inv_hw, cin_tile):
    """Grid = (batch, cin_tiles); cin axis is the (sequential) reduction axis.

    x_ref:      (1, cin_tile, HW)  input slab (native NCHW layout, HW on lanes)
    w_ref:      (Cout, Cin)        1x1 conv weight (PyTorch (Cout, Cin) layout)
    o_ref:      (1, Cout, HW)      output block (broadcast over all HW lanes)
    pooled_ref: (Cin, 1) f32       VMEM scratch holding the pooled column
    """
    c = pl.program_id(1)

    # Partial global-average-pool for this Cin tile: one lane-axis reduce per
    # slab (VPU adds across vregs + a single XLU cross-lane reduce).
    x = x_ref[0].astype(jnp.float32)                          # (cin_tile, HW)
    part = jnp.sum(x, axis=-1, keepdims=True) * inv_hw        # (cin_tile, 1)
    start = pl.multiple_of(c * cin_tile, cin_tile)
    pooled_ref[pl.ds(start, cin_tile), :] = part

    # Finalize once per batch element: single MXU matmul, ReLU, broadcast store.
    @pl.when(c == pl.num_programs(1) - 1)
    def _():
        w = w_ref[...].astype(jnp.float32)                    # (Cout, Cin)
        y = jnp.dot(w, pooled_ref[...],
                    preferred_element_type=jnp.float32)       # (Cout, 1)
        y = jnp.maximum(y, 0.0)                               # ReLU
        # 1x1 -> (H, W) bilinear upsample with align_corners=True is an exact
        # spatial broadcast: replicate across the HW lane axis and store.
        o_ref[0] = jnp.broadcast_to(y, o_ref.shape[1:]).astype(o_ref.dtype)


def _pick_cin_tile(cin, hw, itemsize, budget_bytes):
    """Largest Cin tile that (a) divides Cin, (b) is a multiple of 8 (sublane
    rule) or equals Cin, and (c) keeps the double-buffered input slab within
    the VMEM budget."""
    if cin % 8 != 0:
        return cin                      # cannot tile cleanly -> take it whole
    if 2 * cin * hw * itemsize <= budget_bytes:
        return cin                      # the whole channel dim already fits
    best = 8
    for t in range(8, cin + 1, 8):
        if cin % t == 0 and 2 * t * hw * itemsize <= budget_bytes:
            best = t
    return best


def aspp_pooling_forward(x_nchw, weight, cin_tile=None):
    """x_nchw: (N, Cin, H, W); weight: (Cout, Cin, 1, 1) (PyTorch layout)."""
    N, Cin, H, W = x_nchw.shape
    Cout = weight.shape[0]
    HW = H * W

    # Free reshapes only — no transposes, no padding, data stays NCHW.
    x = x_nchw.reshape(N, Cin, HW)
    w = weight.reshape(Cout, Cin)

    itemsize = x.dtype.itemsize
    w_itemsize = w.dtype.itemsize

    if cin_tile is None:
        # Budget for the double-buffered input slab; comfortable on v5e (16 MiB
        # scoped default raised below), v6e and v7x.
        cin_tile = _pick_cin_tile(Cin, HW, itemsize,
                                  budget_bytes=8 * 1024 * 1024)
    assert Cin % cin_tile == 0, (Cin, cin_tile)
    n_cin = Cin // cin_tile

    vmem_est = (2 * cin_tile * HW * itemsize      # double-buffered x slab
                + 2 * Cout * HW * itemsize        # double-buffered out block
                + Cout * Cin * w_itemsize         # single-buffered weight
                + Cin * 128 * 4                   # pooled scratch (lane-padded)
                + (1 << 20))                      # slack
    vmem_limit = int(min(max(vmem_est, 32 * 1024 * 1024), 64 * 1024 * 1024))

    cost = pl.CostEstimate(
        flops=2 * N * Cin * Cout + N * Cin * HW,
        transcendentals=0,
        bytes_accessed=(N * Cin * HW * itemsize
                        + N * Cout * HW * itemsize
                        + Cout * Cin * w_itemsize))

    out = pl.pallas_call(
        functools.partial(_aspp_pooling_kernel,
                          inv_hw=1.0 / float(HW), cin_tile=cin_tile),
        out_shape=jax.ShapeDtypeStruct((N, Cout, HW), x.dtype),
        grid=(N, n_cin),
        in_specs=[
            # Input slab: HW is always the full last dim (no tiling there), so
            # the (8, 128) rule is satisfied for any H*W.
            pl.BlockSpec((1, cin_tile, HW), lambda n, c: (n, c, 0)),
            # Grid-invariant weight: fetch once, single buffer.
            pl.BlockSpec((Cout, Cin), lambda n, c: (0, 0),
                         pipeline_mode=pl.Buffered(1)),
        ],
        out_specs=pl.BlockSpec((1, Cout, HW), lambda n, c: (n, 0, 0)),
        scratch_shapes=[pltpu.VMEM((Cin, 1), jnp.float32)],
        compiler_params=pltpu.CompilerParams(
            dimension_semantics=("parallel", "arbitrary"),
            vmem_limit_bytes=vmem_limit),
        cost_estimate=cost,
    )(x, w)

    return out.reshape(N, Cout, H, W)


# ----------------------------------------------------------------------------
# Pure-JAX reference for the correctness check
# ----------------------------------------------------------------------------
def aspp_pooling_reference(x_nchw, weight):
    pooled = jnp.mean(x_nchw.astype(jnp.float32), axis=(2, 3))        # (N, Cin)
    w = weight.reshape(weight.shape[0], weight.shape[1]).astype(jnp.float32)
    y = jnp.maximum(jnp.einsum('nc,oc->no', pooled, w), 0.0)          # (N, Cout)
    N, _, H, W = x_nchw.shape
    # bilinear upsample of a 1x1 map with align_corners=True == broadcast
    out = jnp.broadcast_to(y[:, :, None, None], (N, y.shape[1], H, W))
    return out.astype(x_nchw.dtype)


# ----------------------------------------------------------------------------
# Main
# ----------------------------------------------------------------------------
if __name__ == "__main__":
    root = jax.random.PRNGKey(0)
    k_x, k_w, k_x2, k_w2 = jax.random.split(root, 4)

    fwd = jax.jit(aspp_pooling_forward, static_argnames=("cin_tile",))

    # Case 1: module-sized small example (single Cin tile).
    in_channels, out_channels, N, H, W = 4, 8, 2, 16, 16
    x = jax.random.normal(k_x, (N, in_channels, H, W), jnp.float32)
    weight = jax.random.normal(
        k_w, (out_channels, in_channels, 1, 1), jnp.float32) * (1.0 / in_channels ** 0.5)

    out = fwd(x, weight)
    jax.block_until_ready(out)
    assert out.shape == (N, out_channels, H, W), out.shape
    err = float(jnp.max(jnp.abs(out - aspp_pooling_reference(x, weight))))
    assert err < 1e-4, f"case1 max abs err {err}"

    # Case 2: exercises the tiled-reduction path (Cin=16 split into 2 tiles).
    in2, out2 = 16, 8
    x2 = jax.random.normal(k_x2, (N, in2, H, W), jnp.float32)
    w2 = jax.random.normal(k_w2, (out2, in2, 1, 1), jnp.float32) * (1.0 / in2 ** 0.5)

    out_b = fwd(x2, w2, cin_tile=8)
    jax.block_until_ready(out_b)
    assert out_b.shape == (N, out2, H, W), out_b.shape
    err2 = float(jnp.max(jnp.abs(out_b - aspp_pooling_reference(x2, w2))))
    assert err2 < 1e-4, f"case2 max abs err {err2}"

    print("KERNEL_OK")
</pallas_src>

<mosaic_0001>
module attributes {stable_mosaic.version = 11 : i64} {
  func.func @_aspp_pooling_kernel(%arg0: i32, %arg1: i32, %arg2: memref<1x4x256xf32, #tpu.memory_space<vmem>>, %arg3: memref<8x4xf32, #tpu.memory_space<vmem>>, %arg4: memref<1x8x256xf32, #tpu.memory_space<vmem>>, %arg5: memref<4x1xf32, #tpu.memory_space<vmem>>) attributes {dimension_semantics = [#tpu.dimension_semantics<parallel>, #tpu.dimension_semantics<arbitrary>], iteration_bounds = array<i64: 2, 1>, scalar_prefetch = 0 : i64, scratch_operands = 1 : i64, tpu.core_type = #tpu.core_type<tc>, window_params = [{transform_indices = @transform_0, window_bounds = array<i64: 1, 4, 256>}, {pipeline_mode = #tpu.pipeline_mode<synchronous>, transform_indices = @transform_1, window_bounds = array<i64: 8, 4>}, {transform_indices = @transform_2, window_bounds = array<i64: 1, 8, 256>}]} {
    %c0 = arith.constant 0 : index
    %c0_0 = arith.constant 0 : index
    %c0_1 = arith.constant 0 : index
    %0 = vector.load %arg2[%c0, %c0_0, %c0_1] : memref<1x4x256xf32, #tpu.memory_space<vmem>>, vector<1x4x256xf32>
    %1 = vector.shape_cast %0 : vector<1x4x256xf32> to vector<4x256xf32>
    %cst = arith.constant dense<0.000000e+00> : vector<4xf32>
    %2 = vector.multi_reduction <add>, %1, %cst [1] : vector<4x256xf32> to vector<4xf32>
    %3 = vector.shape_cast %2 : vector<4xf32> to vector<4x1xf32>
    %cst_2 = arith.constant 3.906250e-03 : f32
    %4 = vector.broadcast %cst_2 : f32 to vector<4x1xf32>
    %5 = arith.mulf %3, %4 : vector<4x1xf32>
    %c4_i32 = arith.constant 4 : i32
    %6 = arith.muli %arg1, %c4_i32 : i32
    %7 = tpu.assume_multiple %6, 4 : i32
    %8 = arith.index_cast %7 : i32 to index
    %c0_3 = arith.constant 0 : index
    %9 = vector.load %arg5[%8, %c0_3] : memref<4x1xf32, #tpu.memory_space<vmem>>, vector<4x1xf32>
    tpu.vector_store %arg5[%8, %c0_3], %5 {strides = array<i32>} : memref<4x1xf32, #tpu.memory_space<vmem>>, vector<4x1xf32>,
    %c0_i32 = arith.constant 0 : i32
    %10 = arith.cmpi eq, %arg1, %c0_i32 : i32
    %11 = arith.extui %10 : i1 to i32
    %c0_i32_4 = arith.constant 0 : i32
    %12 = arith.cmpi ne, %11, %c0_i32_4 : i32
    scf.if %12 {
      %c0_5 = arith.constant 0 : index
      %c0_6 = arith.constant 0 : index
      %13 = vector.load %arg3[%c0_5, %c0_6] : memref<8x4xf32, #tpu.memory_space<vmem>>, vector<8x4xf32>
      %c0_7 = arith.constant 0 : index
      %c0_8 = arith.constant 0 : index
      %14 = vector.load %arg5[%c0_7, %c0_8] : memref<4x1xf32, #tpu.memory_space<vmem>>, vector<4x1xf32>
      %cst_9 = arith.constant dense<0.000000e+00> : vector<8x1xf32>
      %15 = tpu.matmul %13, %14, %cst_9 {dimension_numbers = #tpu.dot_dimension_numbers<[1], [0], [0], [1], [0, 0, 1, 1], [], []>} : vector<8x4xf32>, vector<4x1xf32>, vector<8x1xf32> -> vector<8x1xf32>
      %cst_10 = arith.constant 0.000000e+00 : f32
      %16 = vector.broadcast %cst_10 : f32 to vector<8x1xf32>
      %17 = arith.maximumf %15, %16 : vector<8x1xf32>
      %18 = vector.shape_cast %17 : vector<8x1xf32> to vector<8x1xf32>
      %19 = vector.broadcast %18 : vector<8x1xf32> to vector<8x256xf32>
      %c0_11 = arith.constant 0 : index
      %c0_12 = arith.constant 0 : index
      %c0_13 = arith.constant 0 : index
      %20 = vector.load %arg4[%c0_11, %c0_12, %c0_13] : memref<1x8x256xf32, #tpu.memory_space<vmem>>, vector<1x8x256xf32>
      %21 = vector.shape_cast %20 : vector<1x8x256xf32> to vector<8x256xf32>
      %22 = vector.shape_cast %19 : vector<8x256xf32> to vector<1x8x256xf32>
      tpu.vector_store %arg4[%c0_11, %c0_12, %c0_13], %22 {strides = array<i32>} : memref<1x8x256xf32, #tpu.memory_space<vmem>>, vector<1x8x256xf32>,
    } else {
    }
    return
  }
  func.func @transform_0(%arg0: i32, %arg1: i32) -> (i32, i32, i32) {
    %c0_i32 = arith.constant 0 : i32
    %c0_i32_0 = arith.constant 0 : i32
    return %arg0, %arg1, %c0_i32 : i32, i32, i32
  }
  func.func @transform_1(%arg0: i32, %arg1: i32) -> (i32, i32) {
    %c0_i32 = arith.constant 0 : i32
    %c0_i32_0 = arith.constant 0 : i32
    %c0_i32_1 = arith.constant 0 : i32
    return %c0_i32, %c0_i32_0 : i32, i32
  }
  func.func @transform_2(%arg0: i32, %arg1: i32) -> (i32, i32, i32) {
    %c0_i32 = arith.constant 0 : i32
    %c0_i32_0 = arith.constant 0 : i32
    %c0_i32_1 = arith.constant 0 : i32
    return %arg0, %c0_i32, %c0_i32_0 : i32, i32, i32
  }
}

</mosaic_0001>

<bundles_post_ra>
// kernel: aspp_pooling_forward.1
= control target key start
LH: loop header
LB: loop body
LE: loop exit
PB: predicated region body
PF: predicated region fallthrough
CT: control target
= control target key end

     0   :  { %s443_s9 = smov 0   ;;  %s445_s10 = smov 0   ;;  %s486_s0 = inlined_call_operand.vmem [shape: f32[2,4,256], index: 0, kind: input, shape index: {}]   ;;  %s487_s1 = inlined_call_operand.vmem [shape: f32[8,4], index: 1, kind: input, shape index: {}]   ;;  %s488_s2 = inlined_call_operand.vmem [shape: f32[2,8,256], index: 2, kind: output, shape index: {}]  }
   0x1   :  { %s447_s11 = smov 0  }
   0x2 LB: > { %s24_s12 = sadd.s32 1, %s419_s10  ;;  %p354_p0 = scmp.ge.s32.totalorder %s423_s11, 1  ;;  %s423_s11 = sphi %s447_s11, %s12_s11   ;;  %s419_s10 = sphi %s445_s10, %s490_s10   ;;  %s415_s9 = sphi %s443_s9, %s489_s9  }
   0x3   : > { %p26_p1 = scmp.ge.s32.totalorder %s24_s12, 2  ;;  %p130_p2 = scmp.lt.s32.totalorder %s423_s11, 3 }
   0x5   : > { %s492_s12 = smov (%p26_p1, %s24_s12), 0  ;;  %p131_p3 = pnand %p354_p0, %p130_p2 }
   0x6   : > { %p156_p4 = scmp.lt.s32.totalorder (!%p131_p3), %s415_s9, 1  ;;  %vm174_vm0 = vcmask (!%p131_p3), 1043456   ;;  %v425_v5 = vmov (!%p131_p3), 0.0   ;;  %vm426_vm1 = vmmov (!%p131_p3), 0   ;;  %vm183_vm2 = vcmask (!%p131_p3), 3072   ;;  %v189_v8 = vld [vmem:[%s487_s1] sm:$0xff] (!%p131_p3) }
   0x7   : > { %134 = sbr.rel (%p131_p3) target bundleno = 519 (0x207), region = 28  ;;  %367 = vmatprep.subr.mxu0 (!%p131_p3), %v425_v5  ;;  %369 = vmatprep.mubr.msk.f32.mxu0 (!%p131_p3), %vm426_vm1, %v425_v5  ;;  %vm191_vm3 = vcmask (!%p131_p3), 31744   ;;  %v427_v10 = vmov (!%p131_p3), 0  }
   0x8   : > { %399 = vset.pattern.permute.xlu0 (!%p131_p3), %v427_v10 }
   0xe   : > { %s494_s9 = smov (!%p156_p4, %s415_s9), 1 }
   0xf   : > { %s363_s13 = sshll.u32 %s494_s9, 3  ;;  %s364_s19 = sshll.u32 %s494_s9, 4 }
  0x10   : > { %s164_s16 = scalar_lea.vmem %s486_s0, %s363_s13  ;;  %s169_s22 = scalar_lea.vmem %s488_s2, %s364_s19 }
  0x11   : > { %v170_v0 = vld [vmem:[%s164_s16] sm:$0xff] }
  0x12   : > { %v172_v1 = vcombine.high %v170_v0, %v170_v0  ;;  %v175_v2 = vsel %vm174_vm0, %v170_v0, 0.0 }
  0x14   : > { %v176_v3 = vsel %vm174_vm0, %v172_v1, 0.0 }
  0x15   : > { %v177_v4 = vadd.f32 %v176_v3, %v175_v2 }
  0x17   : > { %178 = vadd.xlane.f32.xlu0 %v177_v4 }
  0xa4   : > { %v179_v6 = vpop.xlane.xlu0 %178 }
  0xa5   : > { %v180_v7 = vmul.f32 0.00390625, %v179_v6 }
  0xa7   : > { %184 = vst.msk [vmem:[#allocation2] sm:$0xf] %vm183_vm2, %v180_v7 }
  0xae   : > { %v190_v9 = vld [vmem:[#allocation2] sm:$0xf] }
  0xaf   : > { %368 = vmatpush3.msk.msra.mxu0 %vm174_vm0, %v190_v9 }
  0xb0   : > { %370 = vmatmul.mubr.msk.f32.vlgmr.msra.gmra.mrb[0].mxu0 %vm191_vm3, %v189_v8 }
 0x183   : > { %v264_v11 = vpop.f32.mrb[0].mxu0 }
 0x184   : > { %v268_v12 = vmax.f32 %v264_v11, 0.0  ;;  %v371_v13 = vpop.f32.mrb[1].mxu0 }
 0x186   : > { %271 = vperm.xlu0 %399, %v268_v12  }
 0x205   : > { %v272_v14 = vpop.permute.xlu0 %271 }
 0x206   : > { %274 = vst [vmem:[%s169_s22] sm:$0xff] %v272_v14  ;;  %275 = vst [vmem:[%s169_s22 + $0x8] sm:$0xff] %v272_v14 }
 0x207 PF: > { %s12_s11 = sadd.s32 1, %s423_s11   ;;  %s489_s9 = smov %s419_s10 }
 0x208   : > { %p9_p5 = scmp.ge.s32.totalorder %s12_s11, 4   ;;  %s490_s10 = smov %s492_s12 }
 0x20a   :  { %11 = sbr.rel (!%p9_p5) target bundleno = 2 (0x2), region = 63 }

</bundles_post_ra>
